<compile_context>
chip_gen: v5e
topology: v5e:2x2
jax: 0.10.0
libtpu: 0.0.40
codegen_flags: <defaults>
</compile_context>

<pallas_src>
import functools
import math

import jax
import jax.numpy as jnp
from jax.experimental import pallas as pl
from jax.experimental.pallas import tpu as pltpu


def _layernorm(x, gamma, beta, eps=1e-12):
    # eps=1e-12 matches the PyTorch module spec (nn.LayerNorm(hidden, eps=1e-12)).
    mean = jnp.mean(x, axis=-1, keepdims=True)
    var = jnp.mean((x - mean) ** 2, axis=-1, keepdims=True)
    return (x - mean) * jax.lax.rsqrt(var + eps) * gamma + beta


def _gelu(x, exact):
    if exact:
        # nn.GELU() default = exact erf-based GELU.
        return 0.5 * x * (1.0 + jax.lax.erf(x * (1.0 / math.sqrt(2.0))))
    # tanh approximation -> EUP slot (use only if VALU-bound and parity is not required).
    c = math.sqrt(2.0 / math.pi)
    return 0.5 * x * (1.0 + jnp.tanh(c * (x + 0.044715 * x * x * x)))


def transformer_layer_kernel(num_heads, head_dim, mxu_dtype, gelu_exact,
                             x_ref,
                             wqkv_ref, bqkv_ref,
                             wo_ref, bo_ref,
                             g1_ref, be1_ref,
                             w1_ref, b1_ref, w2_ref, b2_ref,
                             g2_ref, be2_ref,
                             out_ref,
                             acc_ref):
    Bt, S, H = x_ref.shape
    M = Bt * S

    # Flatten the batch block so every projection / FFN matmul sees M = Bt*S rows.
    # Only the bf16 copy of x is held as a value; the f32 residual is re-read below.
    x_m = x_ref[...].reshape(M, H).astype(mxu_dtype)

    # --- Fused QKV projection: one (M, H) x (H, 3H) MXU pass, f32 accumulation ----
    qkv = jnp.dot(x_m, wqkv_ref[...], preferred_element_type=jnp.float32) + bqkv_ref[...]

    scale = 1.0 / math.sqrt(head_dim)
    q = (qkv[:, 0:H] * scale).reshape(Bt, S, H).astype(mxu_dtype)
    k = qkv[:, H:2 * H].reshape(Bt, S, H).astype(mxu_dtype)
    v = qkv[:, 2 * H:3 * H].reshape(Bt, S, H).astype(mxu_dtype)

    # Accumulator initialised with the residual (re-read from VMEM) + out_proj bias.
    # All later writes to acc_ref are full (M, H) lane-dense slabs.
    acc_ref[...] = x_ref[...].reshape(M, H).astype(jnp.float32) + bo_ref[...]

    # --- Multi-head self-attention: per-head, batched over Bt; each head's context is
    # folded directly into the output projection (wo_ref pre-reshaped to (NH, d, H)),
    # so there are no sub-128-lane context stores and no ctx scratch round-trip.
    for h in range(num_heads):
        sl = slice(h * head_dim, (h + 1) * head_dim)
        qh, kh, vh = q[:, :, sl], k[:, :, sl], v[:, :, sl]          # (Bt, S, d)
        # Contract head_dim directly — no materialized transpose of K.
        scores = jnp.einsum("bqd,bkd->bqk", qh, kh,
                            preferred_element_type=jnp.float32)     # (Bt, S, S)
        scores = scores - jnp.max(scores, axis=-1, keepdims=True)
        e = jnp.exp(scores)
        inv = pl.reciprocal(jnp.sum(e, axis=-1, keepdims=True), approx=True)
        probs = (e * inv).astype(mxu_dtype)
        ctx_h = jnp.einsum("bqk,bkd->bqd", probs, vh,
                           preferred_element_type=jnp.float32)      # (Bt, S, d)
        acc_ref[...] += jnp.dot(ctx_h.reshape(M, head_dim).astype(mxu_dtype),
                                wo_ref[h], preferred_element_type=jnp.float32)

    # --- residual + LayerNorm 1 (f32), kept resident in the accumulator -----------
    acc_ref[...] = _layernorm(acc_ref[...], g1_ref[...], be1_ref[...])

    # --- Feed-forward network ------------------------------------------------------
    ff = jnp.dot(acc_ref[...].astype(mxu_dtype), w1_ref[...],
                 preferred_element_type=jnp.float32) + b1_ref[...]
    ff = _gelu(ff, gelu_exact)
    ff = jnp.dot(ff.astype(mxu_dtype), w2_ref[...],
                 preferred_element_type=jnp.float32) + b2_ref[...]

    # --- residual + LayerNorm 2 (f32) ----------------------------------------------
    out = _layernorm(acc_ref[...] + ff, g2_ref[...], be2_ref[...])
    out_ref[...] = out.reshape(Bt, S, H).astype(out_ref.dtype)


def _pick_block_b(B, S, H, target_rows=512, act_budget_bytes=32 << 20):
    """Largest divisor of B (capped at B//2 so the grid has >=2 steps for v7x's 2 TCs)
    such that the per-step f32 activation footprint stays within budget."""
    max_bb = max(B // 2, 1)
    best = 1
    for bb in range(1, max_bb + 1):
        if B % bb:
            continue
        if bb * S * H * 4 * 6 > act_budget_bytes:   # rough f32 activation footprint
            break
        best = bb
        if bb * S >= target_rows:
            break
    return best


def _vmem_limit_bytes(block_b, S, H, I, mxu_dtype):
    """Generation-aware VMEM limit: estimate footprint, clamp to ~90% of physical VMEM."""
    wbytes = jnp.dtype(mxu_dtype).itemsize
    weights = (3 * H * H + H * H + H * I + I * H) * wbytes   # single-buffered (Buffered(1))
    biases = (3 * H + H + I + H + 4 * H) * 4
    io_blocks = 2 * 2 * block_b * S * H * 4                  # x + out, double-buffered
    scratch = block_b * S * H * 4                            # f32 accumulator
    temps = block_b * S * (3 * H + I + S) * 4                # qkv / ff / scores temporaries
    need = int((weights + biases + io_blocks + scratch + temps) * 1.25)  # compiler headroom
    try:
        cap = int(pltpu.get_tpu_info().vmem_capacity_bytes * 0.9)
    except Exception:
        cap = 60 << 20   # conservative: fits v7x (64 MiB) with headroom, safe on v5e/v6e
    return max(min(need, cap), 16 << 20)


def transformer_layer(x, params, num_heads, *, mxu_dtype=jnp.bfloat16, block_b=None,
                      gelu_exact=True):
    B, S, H = x.shape
    I = params["w1"].shape[1]
    head_dim = H // num_heads

    if block_b is None:
        block_b = _pick_block_b(B, S, H)
    assert B % block_b == 0

    # Host-side prep: fuse QKV weights/biases, reshape Wo to (NH, d, H) for per-head
    # folding into the output projection, cast MXU weight operands to bf16.
    wqkv = jnp.concatenate([params["wq"], params["wk"], params["wv"]], axis=1).astype(mxu_dtype)
    bqkv = jnp.concatenate([params["bq"], params["bk"], params["bv"]], axis=1).astype(jnp.float32)
    wo_r = params["wo"].reshape(num_heads, head_dim, H).astype(mxu_dtype)
    w1 = params["w1"].astype(mxu_dtype)
    w2 = params["w2"].astype(mxu_dtype)

    def const_spec(shape):
        zeros = (0,) * len(shape)
        # Grid-invariant operand: single-buffered (no wasted second VMEM copy).
        return pl.BlockSpec(shape, lambda b, _z=zeros: _z, pipeline_mode=pl.Buffered(1))

    in_specs = [
        pl.BlockSpec((block_b, S, H), lambda b: (b, 0, 0)),       # x
        const_spec((H, 3 * H)), const_spec((1, 3 * H)),           # fused Wqkv, bqkv
        const_spec((num_heads, head_dim, H)), const_spec((1, H)),  # Wo (per-head), bo
        const_spec((1, H)), const_spec((1, H)),                   # ln1 gamma, beta
        const_spec((H, I)), const_spec((1, I)),                   # W1, b1
        const_spec((I, H)), const_spec((1, H)),                   # W2, b2
        const_spec((1, H)), const_spec((1, H)),                   # ln2 gamma, beta
    ]

    # Advisory cost estimate so XLA overlaps surrounding HLO with this fused layer.
    wbytes = jnp.dtype(mxu_dtype).itemsize
    flops = 2 * B * S * H * (3 * H + H + 2 * I) + 4 * B * S * S * H
    transcendentals = B * num_heads * S * S + B * S * I
    bytes_accessed = (4 * H * H + 2 * H * I) * wbytes + 2 * B * S * H * 4
    cost = pl.CostEstimate(flops=int(flops), transcendentals=int(transcendentals),
                           bytes_accessed=int(bytes_accessed))

    kernel = functools.partial(transformer_layer_kernel, num_heads, head_dim, mxu_dtype,
                               gelu_exact)
    return pl.pallas_call(
        kernel,
        out_shape=jax.ShapeDtypeStruct((B, S, H), x.dtype),
        grid_spec=pltpu.PrefetchScalarGridSpec(
            num_scalar_prefetch=0,
            grid=(B // block_b,),
            in_specs=in_specs,
            out_specs=pl.BlockSpec((block_b, S, H), lambda b: (b, 0, 0)),
            scratch_shapes=[pltpu.VMEM((block_b * S, H), jnp.float32)],  # attn/h1 accumulator
        ),
        compiler_params=pltpu.CompilerParams(
            dimension_semantics=("parallel",),
            vmem_limit_bytes=_vmem_limit_bytes(block_b, S, H, I, mxu_dtype),
        ),
        cost_estimate=cost,
    )(x, wqkv, bqkv, wo_r, params["bo"],
      params["g1"], params["be1"],
      w1, params["b1"], w2, params["b2"],
      params["g2"], params["be2"])


def reference_forward(x, p, num_heads):
    B, S, H = x.shape
    d = H // num_heads

    def ln(v, g, b):
        m = jnp.mean(v, -1, keepdims=True)
        var = jnp.mean((v - m) ** 2, -1, keepdims=True)
        return (v - m) / jnp.sqrt(var + 1e-12) * g + b

    q = (x @ p["wq"] + p["bq"]).reshape(B, S, num_heads, d).transpose(0, 2, 1, 3)
    k = (x @ p["wk"] + p["bk"]).reshape(B, S, num_heads, d).transpose(0, 2, 1, 3)
    v = (x @ p["wv"] + p["bv"]).reshape(B, S, num_heads, d).transpose(0, 2, 1, 3)
    s = jnp.einsum("bhqd,bhkd->bhqk", q, k) / math.sqrt(d)
    pr = jax.nn.softmax(s, axis=-1)
    ctx = jnp.einsum("bhqk,bhkd->bhqd", pr, v).transpose(0, 2, 1, 3).reshape(B, S, H)
    attn = ctx @ p["wo"] + p["bo"]
    h1 = ln(x + attn, p["g1"], p["be1"])
    ff = jax.nn.gelu(h1 @ p["w1"] + p["b1"], approximate=False)
    ff = ff @ p["w2"] + p["b2"]
    return ln(h1 + ff, p["g2"], p["be2"])


if __name__ == "__main__":
    B, S, H, NH, I = 2, 8, 32, 4, 64

    key = jax.random.PRNGKey(0)
    keys = jax.random.split(key, 8)
    init = lambda k, shp: (0.02 * jax.random.normal(k, shp)).astype(jnp.float32)

    params = {
        "wq": init(keys[0], (H, H)), "bq": init(keys[1], (1, H)),
        "wk": init(keys[2], (H, H)), "bk": init(keys[3], (1, H)),
        "wv": init(keys[4], (H, H)), "bv": init(keys[5], (1, H)),
        "wo": init(keys[6], (H, H)), "bo": jnp.zeros((1, H), jnp.float32),
        "g1": jnp.ones((1, H), jnp.float32), "be1": jnp.zeros((1, H), jnp.float32),
        "w1": init(jax.random.fold_in(key, 10), (H, I)),
        "b1": jnp.zeros((1, I), jnp.float32),
        "w2": init(jax.random.fold_in(key, 11), (I, H)),
        "b2": jnp.zeros((1, H), jnp.float32),
        "g2": jnp.ones((1, H), jnp.float32), "be2": jnp.zeros((1, H), jnp.float32),
    }

    x = jax.random.normal(jax.random.fold_in(key, 99), (B, S, H), jnp.float32)

    out = transformer_layer(x, params, NH)
    out = jax.block_until_ready(out)

    ref = reference_forward(x, params, NH)
    assert out.shape == (B, S, H)
    # Tolerance accounts for bf16 MXU operands + approx reciprocal in softmax
    # (stats and accumulation are f32, so error stays well inside this bound).
    assert jnp.allclose(out, ref, atol=1e-2, rtol=1e-2), "mismatch vs JAX reference"

    print("KERNEL_OK")
</pallas_src>

<mosaic_0001>
module attributes {stable_mosaic.version = 11 : i64} {
  func.func @transformer_layer_kernel(%arg0: i32, %arg1: memref<1x8x32xf32, #tpu.memory_space<vmem>>, %arg2: memref<32x96xbf16, #tpu.memory_space<vmem>>, %arg3: memref<1x96xf32, #tpu.memory_space<vmem>>, %arg4: memref<4x8x32xbf16, #tpu.memory_space<vmem>>, %arg5: memref<1x32xf32, #tpu.memory_space<vmem>>, %arg6: memref<1x32xf32, #tpu.memory_space<vmem>>, %arg7: memref<1x32xf32, #tpu.memory_space<vmem>>, %arg8: memref<32x64xbf16, #tpu.memory_space<vmem>>, %arg9: memref<1x64xf32, #tpu.memory_space<vmem>>, %arg10: memref<64x32xbf16, #tpu.memory_space<vmem>>, %arg11: memref<1x32xf32, #tpu.memory_space<vmem>>, %arg12: memref<1x32xf32, #tpu.memory_space<vmem>>, %arg13: memref<1x32xf32, #tpu.memory_space<vmem>>, %arg14: memref<1x8x32xf32, #tpu.memory_space<vmem>>, %arg15: memref<8x32xf32, #tpu.memory_space<vmem>>) attributes {dimension_semantics = [#tpu.dimension_semantics<parallel>], iteration_bounds = array<i64: 2>, scalar_prefetch = 0 : i64, scratch_operands = 1 : i64, tpu.core_type = #tpu.core_type<tc>, window_params = [{transform_indices = @transform_0, window_bounds = array<i64: 1, 8, 32>}, {pipeline_mode = #tpu.pipeline_mode<synchronous>, transform_indices = @transform_1, window_bounds = array<i64: 32, 96>}, {pipeline_mode = #tpu.pipeline_mode<synchronous>, transform_indices = @transform_2, window_bounds = array<i64: 1, 96>}, {pipeline_mode = #tpu.pipeline_mode<synchronous>, transform_indices = @transform_3, window_bounds = array<i64: 4, 8, 32>}, {pipeline_mode = #tpu.pipeline_mode<synchronous>, transform_indices = @transform_4, window_bounds = array<i64: 1, 32>}, {pipeline_mode = #tpu.pipeline_mode<synchronous>, transform_indices = @transform_5, window_bounds = array<i64: 1, 32>}, {pipeline_mode = #tpu.pipeline_mode<synchronous>, transform_indices = @transform_6, window_bounds = array<i64: 1, 32>}, {pipeline_mode = #tpu.pipeline_mode<synchronous>, transform_indices = @transform_7, window_bounds = array<i64: 32, 64>}, {pipeline_mode = #tpu.pipeline_mode<synchronous>, transform_indices = @transform_8, window_bounds = array<i64: 1, 64>}, {pipeline_mode = #tpu.pipeline_mode<synchronous>, transform_indices = @transform_9, window_bounds = array<i64: 64, 32>}, {pipeline_mode = #tpu.pipeline_mode<synchronous>, transform_indices = @transform_10, window_bounds = array<i64: 1, 32>}, {pipeline_mode = #tpu.pipeline_mode<synchronous>, transform_indices = @transform_11, window_bounds = array<i64: 1, 32>}, {pipeline_mode = #tpu.pipeline_mode<synchronous>, transform_indices = @transform_12, window_bounds = array<i64: 1, 32>}, {transform_indices = @transform_13, window_bounds = array<i64: 1, 8, 32>}]} {
    %c0 = arith.constant 0 : index
    %c0_0 = arith.constant 0 : index
    %c0_1 = arith.constant 0 : index
    %0 = vector.load %arg1[%c0, %c0_0, %c0_1] : memref<1x8x32xf32, #tpu.memory_space<vmem>>, vector<1x8x32xf32>
    %1 = vector.shape_cast %0 : vector<1x8x32xf32> to vector<8x32xf32>
    %2 = arith.truncf %1 : vector<8x32xf32> to vector<8x32xbf16>
    %c0_2 = arith.constant 0 : index
    %c0_3 = arith.constant 0 : index
    %3 = vector.load %arg2[%c0_2, %c0_3] : memref<32x96xbf16, #tpu.memory_space<vmem>>, vector<32x96xbf16>
    %cst = arith.constant dense<0.000000e+00> : vector<8x96xf32>
    %4 = tpu.matmul %2, %3, %cst {dimension_numbers = #tpu.dot_dimension_numbers<[1], [0], [0], [1], [0, 0, 1, 1], [], []>} : vector<8x32xbf16>, vector<32x96xbf16>, vector<8x96xf32> -> vector<8x96xf32>
    %c0_4 = arith.constant 0 : index
    %c0_5 = arith.constant 0 : index
    %5 = vector.load %arg3[%c0_4, %c0_5] : memref<1x96xf32, #tpu.memory_space<vmem>>, vector<1x96xf32>
    %6 = vector.broadcast %5 : vector<1x96xf32> to vector<8x96xf32>
    %7 = arith.addf %4, %6 : vector<8x96xf32>
    %8 = vector.extract_strided_slice %7 {offsets = [0, 0], sizes = [8, 32], strides = [1, 1]} : vector<8x96xf32> to vector<8x32xf32>
    %cst_6 = arith.constant 0.353553385 : f32
    %9 = vector.broadcast %cst_6 : f32 to vector<8x32xf32>
    %10 = arith.mulf %8, %9 : vector<8x32xf32>
    %11 = vector.shape_cast %10 : vector<8x32xf32> to vector<1x8x32xf32>
    %12 = arith.truncf %11 : vector<1x8x32xf32> to vector<1x8x32xbf16>
    %13 = vector.extract_strided_slice %7 {offsets = [0, 32], sizes = [8, 32], strides = [1, 1]} : vector<8x96xf32> to vector<8x32xf32>
    %14 = vector.shape_cast %13 : vector<8x32xf32> to vector<1x8x32xf32>
    %15 = arith.truncf %14 : vector<1x8x32xf32> to vector<1x8x32xbf16>
    %16 = vector.extract_strided_slice %7 {offsets = [0, 64], sizes = [8, 32], strides = [1, 1]} : vector<8x96xf32> to vector<8x32xf32>
    %17 = vector.shape_cast %16 : vector<8x32xf32> to vector<1x8x32xf32>
    %18 = arith.truncf %17 : vector<1x8x32xf32> to vector<1x8x32xbf16>
    %c0_7 = arith.constant 0 : index
    %c0_8 = arith.constant 0 : index
    %c0_9 = arith.constant 0 : index
    %19 = vector.load %arg1[%c0_7, %c0_8, %c0_9] : memref<1x8x32xf32, #tpu.memory_space<vmem>>, vector<1x8x32xf32>
    %20 = vector.shape_cast %19 : vector<1x8x32xf32> to vector<8x32xf32>
    %c0_10 = arith.constant 0 : index
    %c0_11 = arith.constant 0 : index
    %21 = vector.load %arg5[%c0_10, %c0_11] : memref<1x32xf32, #tpu.memory_space<vmem>>, vector<1x32xf32>
    %22 = vector.broadcast %21 : vector<1x32xf32> to vector<8x32xf32>
    %23 = arith.addf %20, %22 : vector<8x32xf32>
    %c0_12 = arith.constant 0 : index
    %c0_13 = arith.constant 0 : index
    %24 = vector.load %arg15[%c0_12, %c0_13] : memref<8x32xf32, #tpu.memory_space<vmem>>, vector<8x32xf32>
    tpu.vector_store %arg15[%c0_12, %c0_13], %23 {strides = array<i32>} : memref<8x32xf32, #tpu.memory_space<vmem>>, vector<8x32xf32>,
    %25 = vector.extract_strided_slice %12 {offsets = [0, 0, 0], sizes = [1, 8, 8], strides = [1, 1, 1]} : vector<1x8x32xbf16> to vector<1x8x8xbf16>
    %26 = vector.extract_strided_slice %15 {offsets = [0, 0, 0], sizes = [1, 8, 8], strides = [1, 1, 1]} : vector<1x8x32xbf16> to vector<1x8x8xbf16>
    %27 = vector.extract_strided_slice %18 {offsets = [0, 0, 0], sizes = [1, 8, 8], strides = [1, 1, 1]} : vector<1x8x32xbf16> to vector<1x8x8xbf16>
    "tpu.trace_start"() <{level = 10 : i32, message = "bqd,bkd->bqk"}> : () -> ()
    %cst_14 = arith.constant dense<0.000000e+00> : vector<1x8x8xf32>
    %28 = tpu.matmul %25, %26, %cst_14 {dimension_numbers = #tpu.dot_dimension_numbers<[2], [2], [1], [1], [0, 0, 0, 1, 1, 1], [0], [0]>} : vector<1x8x8xbf16>, vector<1x8x8xbf16>, vector<1x8x8xf32> -> vector<1x8x8xf32>
    "tpu.trace_stop"() : () -> ()
    %cst_15 = arith.constant dense<0xFF800000> : vector<1x8xf32>
    %29 = vector.multi_reduction <maximumf>, %28, %cst_15 [2] : vector<1x8x8xf32> to vector<1x8xf32>
    %30 = vector.shape_cast %29 : vector<1x8xf32> to vector<1x8x1xf32>
    %31 = vector.broadcast %30 : vector<1x8x1xf32> to vector<1x8x8xf32>
    %32 = arith.subf %28, %31 : vector<1x8x8xf32>
    %33 = math.exp %32 : vector<1x8x8xf32>
    %cst_16 = arith.constant dense<0.000000e+00> : vector<1x8xf32>
    %34 = vector.multi_reduction <add>, %33, %cst_16 [2] : vector<1x8x8xf32> to vector<1x8xf32>
    %35 = vector.shape_cast %34 : vector<1x8xf32> to vector<1x8x1xf32>
    %36 = tpu.reciprocal %35 {approx = true} : vector<1x8x1xf32> -> vector<1x8x1xf32>
    %37 = vector.broadcast %36 : vector<1x8x1xf32> to vector<1x8x8xf32>
    %38 = arith.mulf %33, %37 : vector<1x8x8xf32>
    %39 = arith.truncf %38 : vector<1x8x8xf32> to vector<1x8x8xbf16>
    "tpu.trace_start"() <{level = 10 : i32, message = "bqk,bkd->bqd"}> : () -> ()
    %cst_17 = arith.constant dense<0.000000e+00> : vector<1x8x8xf32>
    %40 = tpu.matmul %39, %27, %cst_17 {dimension_numbers = #tpu.dot_dimension_numbers<[2], [1], [1], [2], [0, 0, 0, 1, 1, 2], [0], [0]>} : vector<1x8x8xbf16>, vector<1x8x8xbf16>, vector<1x8x8xf32> -> vector<1x8x8xf32>
    "tpu.trace_stop"() : () -> ()
    %c0_18 = arith.constant 0 : index
    %c0_19 = arith.constant 0 : index
    %41 = vector.load %arg15[%c0_18, %c0_19] : memref<8x32xf32, #tpu.memory_space<vmem>>, vector<8x32xf32>
    %42 = vector.shape_cast %40 : vector<1x8x8xf32> to vector<8x8xf32>
    %43 = arith.truncf %42 : vector<8x8xf32> to vector<8x8xbf16>
    %c0_20 = arith.constant 0 : index
    %c0_21 = arith.constant 0 : index
    %c0_22 = arith.constant 0 : index
    %44 = vector.load %arg4[%c0_20, %c0_21, %c0_22] : memref<4x8x32xbf16, #tpu.memory_space<vmem>>, vector<1x8x32xbf16>
    %45 = vector.shape_cast %44 : vector<1x8x32xbf16> to vector<8x32xbf16>
    %cst_23 = arith.constant dense<0.000000e+00> : vector<8x32xf32>
    %46 = tpu.matmul %43, %45, %cst_23 {dimension_numbers = #tpu.dot_dimension_numbers<[1], [0], [0], [1], [0, 0, 1, 1], [], []>} : vector<8x8xbf16>, vector<8x32xbf16>, vector<8x32xf32> -> vector<8x32xf32>
    %47 = arith.addf %41, %46 : vector<8x32xf32>
    %c0_24 = arith.constant 0 : index
    %c0_25 = arith.constant 0 : index
    %48 = vector.load %arg15[%c0_24, %c0_25] : memref<8x32xf32, #tpu.memory_space<vmem>>, vector<8x32xf32>
    tpu.vector_store %arg15[%c0_24, %c0_25], %47 {strides = array<i32>} : memref<8x32xf32, #tpu.memory_space<vmem>>, vector<8x32xf32>,
    %49 = vector.extract_strided_slice %12 {offsets = [0, 0, 8], sizes = [1, 8, 8], strides = [1, 1, 1]} : vector<1x8x32xbf16> to vector<1x8x8xbf16>
    %50 = vector.extract_strided_slice %15 {offsets = [0, 0, 8], sizes = [1, 8, 8], strides = [1, 1, 1]} : vector<1x8x32xbf16> to vector<1x8x8xbf16>
    %51 = vector.extract_strided_slice %18 {offsets = [0, 0, 8], sizes = [1, 8, 8], strides = [1, 1, 1]} : vector<1x8x32xbf16> to vector<1x8x8xbf16>
    "tpu.trace_start"() <{level = 10 : i32, message = "bqd,bkd->bqk"}> : () -> ()
    %cst_26 = arith.constant dense<0.000000e+00> : vector<1x8x8xf32>
    %52 = tpu.matmul %49, %50, %cst_26 {dimension_numbers = #tpu.dot_dimension_numbers<[2], [2], [1], [1], [0, 0, 0, 1, 1, 1], [0], [0]>} : vector<1x8x8xbf16>, vector<1x8x8xbf16>, vector<1x8x8xf32> -> vector<1x8x8xf32>
    "tpu.trace_stop"() : () -> ()
    %cst_27 = arith.constant dense<0xFF800000> : vector<1x8xf32>
    %53 = vector.multi_reduction <maximumf>, %52, %cst_27 [2] : vector<1x8x8xf32> to vector<1x8xf32>
    %54 = vector.shape_cast %53 : vector<1x8xf32> to vector<1x8x1xf32>
    %55 = vector.broadcast %54 : vector<1x8x1xf32> to vector<1x8x8xf32>
    %56 = arith.subf %52, %55 : vector<1x8x8xf32>
    %57 = math.exp %56 : vector<1x8x8xf32>
    %cst_28 = arith.constant dense<0.000000e+00> : vector<1x8xf32>
    %58 = vector.multi_reduction <add>, %57, %cst_28 [2] : vector<1x8x8xf32> to vector<1x8xf32>
    %59 = vector.shape_cast %58 : vector<1x8xf32> to vector<1x8x1xf32>
    %60 = tpu.reciprocal %59 {approx = true} : vector<1x8x1xf32> -> vector<1x8x1xf32>
    %61 = vector.broadcast %60 : vector<1x8x1xf32> to vector<1x8x8xf32>
    %62 = arith.mulf %57, %61 : vector<1x8x8xf32>
    %63 = arith.truncf %62 : vector<1x8x8xf32> to vector<1x8x8xbf16>
    "tpu.trace_start"() <{level = 10 : i32, message = "bqk,bkd->bqd"}> : () -> ()
    %cst_29 = arith.constant dense<0.000000e+00> : vector<1x8x8xf32>
    %64 = tpu.matmul %63, %51, %cst_29 {dimension_numbers = #tpu.dot_dimension_numbers<[2], [1], [1], [2], [0, 0, 0, 1, 1, 2], [0], [0]>} : vector<1x8x8xbf16>, vector<1x8x8xbf16>, vector<1x8x8xf32> -> vector<1x8x8xf32>
    "tpu.trace_stop"() : () -> ()
    %c0_30 = arith.constant 0 : index
    %c0_31 = arith.constant 0 : index
    %65 = vector.load %arg15[%c0_30, %c0_31] : memref<8x32xf32, #tpu.memory_space<vmem>>, vector<8x32xf32>
    %66 = vector.shape_cast %64 : vector<1x8x8xf32> to vector<8x8xf32>
    %67 = arith.truncf %66 : vector<8x8xf32> to vector<8x8xbf16>
    %c1 = arith.constant 1 : index
    %c0_32 = arith.constant 0 : index
    %c0_33 = arith.constant 0 : index
    %68 = vector.load %arg4[%c1, %c0_32, %c0_33] : memref<4x8x32xbf16, #tpu.memory_space<vmem>>, vector<1x8x32xbf16>
    %69 = vector.shape_cast %68 : vector<1x8x32xbf16> to vector<8x32xbf16>
    %cst_34 = arith.constant dense<0.000000e+00> : vector<8x32xf32>
    %70 = tpu.matmul %67, %69, %cst_34 {dimension_numbers = #tpu.dot_dimension_numbers<[1], [0], [0], [1], [0, 0, 1, 1], [], []>} : vector<8x8xbf16>, vector<8x32xbf16>, vector<8x32xf32> -> vector<8x32xf32>
    %71 = arith.addf %65, %70 : vector<8x32xf32>
    %c0_35 = arith.constant 0 : index
    %c0_36 = arith.constant 0 : index
    %72 = vector.load %arg15[%c0_35, %c0_36] : memref<8x32xf32, #tpu.memory_space<vmem>>, vector<8x32xf32>
    tpu.vector_store %arg15[%c0_35, %c0_36], %71 {strides = array<i32>} : memref<8x32xf32, #tpu.memory_space<vmem>>, vector<8x32xf32>,
    %73 = vector.extract_strided_slice %12 {offsets = [0, 0, 16], sizes = [1, 8, 8], strides = [1, 1, 1]} : vector<1x8x32xbf16> to vector<1x8x8xbf16>
    %74 = vector.extract_strided_slice %15 {offsets = [0, 0, 16], sizes = [1, 8, 8], strides = [1, 1, 1]} : vector<1x8x32xbf16> to vector<1x8x8xbf16>
    %75 = vector.extract_strided_slice %18 {offsets = [0, 0, 16], sizes = [1, 8, 8], strides = [1, 1, 1]} : vector<1x8x32xbf16> to vector<1x8x8xbf16>
    "tpu.trace_start"() <{level = 10 : i32, message = "bqd,bkd->bqk"}> : () -> ()
    %cst_37 = arith.constant dense<0.000000e+00> : vector<1x8x8xf32>
    %76 = tpu.matmul %73, %74, %cst_37 {dimension_numbers = #tpu.dot_dimension_numbers<[2], [2], [1], [1], [0, 0, 0, 1, 1, 1], [0], [0]>} : vector<1x8x8xbf16>, vector<1x8x8xbf16>, vector<1x8x8xf32> -> vector<1x8x8xf32>
    "tpu.trace_stop"() : () -> ()
    %cst_38 = arith.constant dense<0xFF800000> : vector<1x8xf32>
    %77 = vector.multi_reduction <maximumf>, %76, %cst_38 [2] : vector<1x8x8xf32> to vector<1x8xf32>
    %78 = vector.shape_cast %77 : vector<1x8xf32> to vector<1x8x1xf32>
    %79 = vector.broadcast %78 : vector<1x8x1xf32> to vector<1x8x8xf32>
    %80 = arith.subf %76, %79 : vector<1x8x8xf32>
    %81 = math.exp %80 : vector<1x8x8xf32>
    %cst_39 = arith.constant dense<0.000000e+00> : vector<1x8xf32>
    %82 = vector.multi_reduction <add>, %81, %cst_39 [2] : vector<1x8x8xf32> to vector<1x8xf32>
    %83 = vector.shape_cast %82 : vector<1x8xf32> to vector<1x8x1xf32>
    %84 = tpu.reciprocal %83 {approx = true} : vector<1x8x1xf32> -> vector<1x8x1xf32>
    %85 = vector.broadcast %84 : vector<1x8x1xf32> to vector<1x8x8xf32>
    %86 = arith.mulf %81, %85 : vector<1x8x8xf32>
    %87 = arith.truncf %86 : vector<1x8x8xf32> to vector<1x8x8xbf16>
    "tpu.trace_start"() <{level = 10 : i32, message = "bqk,bkd->bqd"}> : () -> ()
    %cst_40 = arith.constant dense<0.000000e+00> : vector<1x8x8xf32>
    %88 = tpu.matmul %87, %75, %cst_40 {dimension_numbers = #tpu.dot_dimension_numbers<[2], [1], [1], [2], [0, 0, 0, 1, 1, 2], [0], [0]>} : vector<1x8x8xbf16>, vector<1x8x8xbf16>, vector<1x8x8xf32> -> vector<1x8x8xf32>
    "tpu.trace_stop"() : () -> ()
    %c0_41 = arith.constant 0 : index
    %c0_42 = arith.constant 0 : index
    %89 = vector.load %arg15[%c0_41, %c0_42] : memref<8x32xf32, #tpu.memory_space<vmem>>, vector<8x32xf32>
    %90 = vector.shape_cast %88 : vector<1x8x8xf32> to vector<8x8xf32>
    %91 = arith.truncf %90 : vector<8x8xf32> to vector<8x8xbf16>
    %c2 = arith.constant 2 : index
    %c0_43 = arith.constant 0 : index
    %c0_44 = arith.constant 0 : index
    %92 = vector.load %arg4[%c2, %c0_43, %c0_44] : memref<4x8x32xbf16, #tpu.memory_space<vmem>>, vector<1x8x32xbf16>
    %93 = vector.shape_cast %92 : vector<1x8x32xbf16> to vector<8x32xbf16>
    %cst_45 = arith.constant dense<0.000000e+00> : vector<8x32xf32>
    %94 = tpu.matmul %91, %93, %cst_45 {dimension_numbers = #tpu.dot_dimension_numbers<[1], [0], [0], [1], [0, 0, 1, 1], [], []>} : vector<8x8xbf16>, vector<8x32xbf16>, vector<8x32xf32> -> vector<8x32xf32>
    %95 = arith.addf %89, %94 : vector<8x32xf32>
    %c0_46 = arith.constant 0 : index
    %c0_47 = arith.constant 0 : index
    %96 = vector.load %arg15[%c0_46, %c0_47] : memref<8x32xf32, #tpu.memory_space<vmem>>, vector<8x32xf32>
    tpu.vector_store %arg15[%c0_46, %c0_47], %95 {strides = array<i32>} : memref<8x32xf32, #tpu.memory_space<vmem>>, vector<8x32xf32>,
    %97 = vector.extract_strided_slice %12 {offsets = [0, 0, 24], sizes = [1, 8, 8], strides = [1, 1, 1]} : vector<1x8x32xbf16> to vector<1x8x8xbf16>
    %98 = vector.extract_strided_slice %15 {offsets = [0, 0, 24], sizes = [1, 8, 8], strides = [1, 1, 1]} : vector<1x8x32xbf16> to vector<1x8x8xbf16>
    %99 = vector.extract_strided_slice %18 {offsets = [0, 0, 24], sizes = [1, 8, 8], strides = [1, 1, 1]} : vector<1x8x32xbf16> to vector<1x8x8xbf16>
    "tpu.trace_start"() <{level = 10 : i32, message = "bqd,bkd->bqk"}> : () -> ()
    %cst_48 = arith.constant dense<0.000000e+00> : vector<1x8x8xf32>
    %100 = tpu.matmul %97, %98, %cst_48 {dimension_numbers = #tpu.dot_dimension_numbers<[2], [2], [1], [1], [0, 0, 0, 1, 1, 1], [0], [0]>} : vector<1x8x8xbf16>, vector<1x8x8xbf16>, vector<1x8x8xf32> -> vector<1x8x8xf32>
    "tpu.trace_stop"() : () -> ()
    %cst_49 = arith.constant dense<0xFF800000> : vector<1x8xf32>
    %101 = vector.multi_reduction <maximumf>, %100, %cst_49 [2] : vector<1x8x8xf32> to vector<1x8xf32>
    %102 = vector.shape_cast %101 : vector<1x8xf32> to vector<1x8x1xf32>
    %103 = vector.broadcast %102 : vector<1x8x1xf32> to vector<1x8x8xf32>
    %104 = arith.subf %100, %103 : vector<1x8x8xf32>
    %105 = math.exp %104 : vector<1x8x8xf32>
    %cst_50 = arith.constant dense<0.000000e+00> : vector<1x8xf32>
    %106 = vector.multi_reduction <add>, %105, %cst_50 [2] : vector<1x8x8xf32> to vector<1x8xf32>
    %107 = vector.shape_cast %106 : vector<1x8xf32> to vector<1x8x1xf32>
    %108 = tpu.reciprocal %107 {approx = true} : vector<1x8x1xf32> -> vector<1x8x1xf32>
    %109 = vector.broadcast %108 : vector<1x8x1xf32> to vector<1x8x8xf32>
    %110 = arith.mulf %105, %109 : vector<1x8x8xf32>
    %111 = arith.truncf %110 : vector<1x8x8xf32> to vector<1x8x8xbf16>
    "tpu.trace_start"() <{level = 10 : i32, message = "bqk,bkd->bqd"}> : () -> ()
    %cst_51 = arith.constant dense<0.000000e+00> : vector<1x8x8xf32>
    %112 = tpu.matmul %111, %99, %cst_51 {dimension_numbers = #tpu.dot_dimension_numbers<[2], [1], [1], [2], [0, 0, 0, 1, 1, 2], [0], [0]>} : vector<1x8x8xbf16>, vector<1x8x8xbf16>, vector<1x8x8xf32> -> vector<1x8x8xf32>
    "tpu.trace_stop"() : () -> ()
    %c0_52 = arith.constant 0 : index
    %c0_53 = arith.constant 0 : index
    %113 = vector.load %arg15[%c0_52, %c0_53] : memref<8x32xf32, #tpu.memory_space<vmem>>, vector<8x32xf32>
    %114 = vector.shape_cast %112 : vector<1x8x8xf32> to vector<8x8xf32>
    %115 = arith.truncf %114 : vector<8x8xf32> to vector<8x8xbf16>
    %c3 = arith.constant 3 : index
    %c0_54 = arith.constant 0 : index
    %c0_55 = arith.constant 0 : index
    %116 = vector.load %arg4[%c3, %c0_54, %c0_55] : memref<4x8x32xbf16, #tpu.memory_space<vmem>>, vector<1x8x32xbf16>
    %117 = vector.shape_cast %116 : vector<1x8x32xbf16> to vector<8x32xbf16>
    %cst_56 = arith.constant dense<0.000000e+00> : vector<8x32xf32>
    %118 = tpu.matmul %115, %117, %cst_56 {dimension_numbers = #tpu.dot_dimension_numbers<[1], [0], [0], [1], [0, 0, 1, 1], [], []>} : vector<8x8xbf16>, vector<8x32xbf16>, vector<8x32xf32> -> vector<8x32xf32>
    %119 = arith.addf %113, %118 : vector<8x32xf32>
    %c0_57 = arith.constant 0 : index
    %c0_58 = arith.constant 0 : index
    %120 = vector.load %arg15[%c0_57, %c0_58] : memref<8x32xf32, #tpu.memory_space<vmem>>, vector<8x32xf32>
    tpu.vector_store %arg15[%c0_57, %c0_58], %119 {strides = array<i32>} : memref<8x32xf32, #tpu.memory_space<vmem>>, vector<8x32xf32>,
    %c0_59 = arith.constant 0 : index
    %c0_60 = arith.constant 0 : index
    %121 = vector.load %arg15[%c0_59, %c0_60] : memref<8x32xf32, #tpu.memory_space<vmem>>, vector<8x32xf32>
    %c0_61 = arith.constant 0 : index
    %c0_62 = arith.constant 0 : index
    %122 = vector.load %arg6[%c0_61, %c0_62] : memref<1x32xf32, #tpu.memory_space<vmem>>, vector<1x32xf32>
    %c0_63 = arith.constant 0 : index
    %c0_64 = arith.constant 0 : index
    %123 = vector.load %arg7[%c0_63, %c0_64] : memref<1x32xf32, #tpu.memory_space<vmem>>, vector<1x32xf32>
    %cst_65 = arith.constant dense<0.000000e+00> : vector<8xf32>
    %124 = vector.multi_reduction <add>, %121, %cst_65 [1] : vector<8x32xf32> to vector<8xf32>
    %125 = vector.shape_cast %124 : vector<8xf32> to vector<8x1xf32>
    %cst_66 = arith.constant 3.200000e+01 : f32
    %126 = vector.broadcast %cst_66 : f32 to vector<8x1xf32>
    %127 = arith.divf %125, %126 : vector<8x1xf32>
    %128 = vector.broadcast %127 : vector<8x1xf32> to vector<8x32xf32>
    %129 = arith.subf %121, %128 : vector<8x32xf32>
    %130 = arith.mulf %129, %129 : vector<8x32xf32>
    %cst_67 = arith.constant dense<0.000000e+00> : vector<8xf32>
    %131 = vector.multi_reduction <add>, %130, %cst_67 [1] : vector<8x32xf32> to vector<8xf32>
    %132 = vector.shape_cast %131 : vector<8xf32> to vector<8x1xf32>
    %cst_68 = arith.constant 3.200000e+01 : f32
    %133 = vector.broadcast %cst_68 : f32 to vector<8x1xf32>
    %134 = arith.divf %132, %133 : vector<8x1xf32>
    %135 = vector.broadcast %127 : vector<8x1xf32> to vector<8x32xf32>
    %136 = arith.subf %121, %135 : vector<8x32xf32>
    %cst_69 = arith.constant 9.99999996E-13 : f32
    %137 = vector.broadcast %cst_69 : f32 to vector<8x1xf32>
    %138 = arith.addf %134, %137 : vector<8x1xf32>
    %139 = math.rsqrt %138 : vector<8x1xf32>
    %140 = vector.broadcast %139 : vector<8x1xf32> to vector<8x32xf32>
    %141 = arith.mulf %136, %140 : vector<8x32xf32>
    %142 = vector.broadcast %122 : vector<1x32xf32> to vector<8x32xf32>
    %143 = arith.mulf %141, %142 : vector<8x32xf32>
    %144 = vector.broadcast %123 : vector<1x32xf32> to vector<8x32xf32>
    %145 = arith.addf %143, %144 : vector<8x32xf32>
    %c0_70 = arith.constant 0 : index
    %c0_71 = arith.constant 0 : index
    %146 = vector.load %arg15[%c0_70, %c0_71] : memref<8x32xf32, #tpu.memory_space<vmem>>, vector<8x32xf32>
    tpu.vector_store %arg15[%c0_70, %c0_71], %145 {strides = array<i32>} : memref<8x32xf32, #tpu.memory_space<vmem>>, vector<8x32xf32>,
    %c0_72 = arith.constant 0 : index
    %c0_73 = arith.constant 0 : index
    %147 = vector.load %arg15[%c0_72, %c0_73] : memref<8x32xf32, #tpu.memory_space<vmem>>, vector<8x32xf32>
    %148 = arith.truncf %147 : vector<8x32xf32> to vector<8x32xbf16>
    %c0_74 = arith.constant 0 : index
    %c0_75 = arith.constant 0 : index
    %149 = vector.load %arg8[%c0_74, %c0_75] : memref<32x64xbf16, #tpu.memory_space<vmem>>, vector<32x64xbf16>
    %cst_76 = arith.constant dense<0.000000e+00> : vector<8x64xf32>
    %150 = tpu.matmul %148, %149, %cst_76 {dimension_numbers = #tpu.dot_dimension_numbers<[1], [0], [0], [1], [0, 0, 1, 1], [], []>} : vector<8x32xbf16>, vector<32x64xbf16>, vector<8x64xf32> -> vector<8x64xf32>
    %c0_77 = arith.constant 0 : index
    %c0_78 = arith.constant 0 : index
    %151 = vector.load %arg9[%c0_77, %c0_78] : memref<1x64xf32, #tpu.memory_space<vmem>>, vector<1x64xf32>
    %152 = vector.broadcast %151 : vector<1x64xf32> to vector<8x64xf32>
    %153 = arith.addf %150, %152 : vector<8x64xf32>
    %cst_79 = arith.constant 5.000000e-01 : f32
    %154 = vector.broadcast %cst_79 : f32 to vector<8x64xf32>
    %155 = arith.mulf %154, %153 : vector<8x64xf32>
    %cst_80 = arith.constant 0.707106769 : f32
    %156 = vector.broadcast %cst_80 : f32 to vector<8x64xf32>
    %157 = arith.mulf %153, %156 : vector<8x64xf32>
    %158 = math.erf %157 : vector<8x64xf32>
    %cst_81 = arith.constant 1.000000e+00 : f32
    %159 = vector.broadcast %cst_81 : f32 to vector<8x64xf32>
    %160 = arith.addf %159, %158 : vector<8x64xf32>
    %161 = arith.mulf %155, %160 : vector<8x64xf32>
    %162 = arith.truncf %161 : vector<8x64xf32> to vector<8x64xbf16>
    %c0_82 = arith.constant 0 : index
    %c0_83 = arith.constant 0 : index
    %163 = vector.load %arg10[%c0_82, %c0_83] : memref<64x32xbf16, #tpu.memory_space<vmem>>, vector<64x32xbf16>
    %cst_84 = arith.constant dense<0.000000e+00> : vector<8x32xf32>
    %164 = tpu.matmul %162, %163, %cst_84 {dimension_numbers = #tpu.dot_dimension_numbers<[1], [0], [0], [1], [0, 0, 1, 1], [], []>} : vector<8x64xbf16>, vector<64x32xbf16>, vector<8x32xf32> -> vector<8x32xf32>
    %c0_85 = arith.constant 0 : index
    %c0_86 = arith.constant 0 : index
    %165 = vector.load %arg11[%c0_85, %c0_86] : memref<1x32xf32, #tpu.memory_space<vmem>>, vector<1x32xf32>
    %166 = vector.broadcast %165 : vector<1x32xf32> to vector<8x32xf32>
    %167 = arith.addf %164, %166 : vector<8x32xf32>
    %c0_87 = arith.constant 0 : index
    %c0_88 = arith.constant 0 : index
    %168 = vector.load %arg15[%c0_87, %c0_88] : memref<8x32xf32, #tpu.memory_space<vmem>>, vector<8x32xf32>
    %169 = arith.addf %168, %167 : vector<8x32xf32>
    %c0_89 = arith.constant 0 : index
    %c0_90 = arith.constant 0 : index
    %170 = vector.load %arg12[%c0_89, %c0_90] : memref<1x32xf32, #tpu.memory_space<vmem>>, vector<1x32xf32>
    %c0_91 = arith.constant 0 : index
    %c0_92 = arith.constant 0 : index
    %171 = vector.load %arg13[%c0_91, %c0_92] : memref<1x32xf32, #tpu.memory_space<vmem>>, vector<1x32xf32>
    %cst_93 = arith.constant dense<0.000000e+00> : vector<8xf32>
    %172 = vector.multi_reduction <add>, %169, %cst_93 [1] : vector<8x32xf32> to vector<8xf32>
    %173 = vector.shape_cast %172 : vector<8xf32> to vector<8x1xf32>
    %cst_94 = arith.constant 3.200000e+01 : f32
    %174 = vector.broadcast %cst_94 : f32 to vector<8x1xf32>
    %175 = arith.divf %173, %174 : vector<8x1xf32>
    %176 = vector.broadcast %175 : vector<8x1xf32> to vector<8x32xf32>
    %177 = arith.subf %169, %176 : vector<8x32xf32>
    %178 = arith.mulf %177, %177 : vector<8x32xf32>
    %cst_95 = arith.constant dense<0.000000e+00> : vector<8xf32>
    %179 = vector.multi_reduction <add>, %178, %cst_95 [1] : vector<8x32xf32> to vector<8xf32>
    %180 = vector.shape_cast %179 : vector<8xf32> to vector<8x1xf32>
    %cst_96 = arith.constant 3.200000e+01 : f32
    %181 = vector.broadcast %cst_96 : f32 to vector<8x1xf32>
    %182 = arith.divf %180, %181 : vector<8x1xf32>
    %183 = vector.broadcast %175 : vector<8x1xf32> to vector<8x32xf32>
    %184 = arith.subf %169, %183 : vector<8x32xf32>
    %cst_97 = arith.constant 9.99999996E-13 : f32
    %185 = vector.broadcast %cst_97 : f32 to vector<8x1xf32>
    %186 = arith.addf %182, %185 : vector<8x1xf32>
    %187 = math.rsqrt %186 : vector<8x1xf32>
    %188 = vector.broadcast %187 : vector<8x1xf32> to vector<8x32xf32>
    %189 = arith.mulf %184, %188 : vector<8x32xf32>
    %190 = vector.broadcast %170 : vector<1x32xf32> to vector<8x32xf32>
    %191 = arith.mulf %189, %190 : vector<8x32xf32>
    %192 = vector.broadcast %171 : vector<1x32xf32> to vector<8x32xf32>
    %193 = arith.addf %191, %192 : vector<8x32xf32>
    %194 = vector.shape_cast %193 : vector<8x32xf32> to vector<1x8x32xf32>
    %c0_98 = arith.constant 0 : index
    %c0_99 = arith.constant 0 : index
    %c0_100 = arith.constant 0 : index
    %195 = vector.load %arg14[%c0_98, %c0_99, %c0_100] : memref<1x8x32xf32, #tpu.memory_space<vmem>>, vector<1x8x32xf32>
    tpu.vector_store %arg14[%c0_98, %c0_99, %c0_100], %194 {strides = array<i32>} : memref<1x8x32xf32, #tpu.memory_space<vmem>>, vector<1x8x32xf32>,
    return
  }
  func.func @transform_0(%arg0: i32) -> (i32, i32, i32) {
    %c0_i32 = arith.constant 0 : i32
    %c0_i32_0 = arith.constant 0 : i32
    %c0_i32_1 = arith.constant 0 : i32
    return %arg0, %c0_i32, %c0_i32_0 : i32, i32, i32
  }
  func.func @transform_1(%arg0: i32) -> (i32, i32) {
    %c0_i32 = arith.constant 0 : i32
    %c0_i32_0 = arith.constant 0 : i32
    %c0_i32_1 = arith.constant 0 : i32
    return %c0_i32, %c0_i32_0 : i32, i32
  }
  func.func @transform_2(%arg0: i32) -> (i32, i32) {
    %c0_i32 = arith.constant 0 : i32
    %c0_i32_0 = arith.constant 0 : i32
    %c0_i32_1 = arith.constant 0 : i32
    return %c0_i32, %c0_i32_0 : i32, i32
  }
  func.func @transform_3(%arg0: i32) -> (i32, i32, i32) {
    %c0_i32 = arith.constant 0 : i32
    %c0_i32_0 = arith.constant 0 : i32
    %c0_i32_1 = arith.constant 0 : i32
    %c0_i32_2 = arith.constant 0 : i32
    return %c0_i32, %c0_i32_0, %c0_i32_1 : i32, i32, i32
  }
  func.func @transform_4(%arg0: i32) -> (i32, i32) {
    %c0_i32 = arith.constant 0 : i32
    %c0_i32_0 = arith.constant 0 : i32
    %c0_i32_1 = arith.constant 0 : i32
    return %c0_i32, %c0_i32_0 : i32, i32
  }
  func.func @transform_5(%arg0: i32) -> (i32, i32) {
    %c0_i32 = arith.constant 0 : i32
    %c0_i32_0 = arith.constant 0 : i32
    %c0_i32_1 = arith.constant 0 : i32
    return %c0_i32, %c0_i32_0 : i32, i32
  }
  func.func @transform_6(%arg0: i32) -> (i32, i32) {
    %c0_i32 = arith.constant 0 : i32
    %c0_i32_0 = arith.constant 0 : i32
    %c0_i32_1 = arith.constant 0 : i32
    return %c0_i32, %c0_i32_0 : i32, i32
  }
  func.func @transform_7(%arg0: i32) -> (i32, i32) {
    %c0_i32 = arith.constant 0 : i32
    %c0_i32_0 = arith.constant 0 : i32
    %c0_i32_1 = arith.constant 0 : i32
    return %c0_i32, %c0_i32_0 : i32, i32
  }
  func.func @transform_8(%arg0: i32) -> (i32, i32) {
    %c0_i32 = arith.constant 0 : i32
    %c0_i32_0 = arith.constant 0 : i32
    %c0_i32_1 = arith.constant 0 : i32
    return %c0_i32, %c0_i32_0 : i32, i32
  }
  func.func @transform_9(%arg0: i32) -> (i32, i32) {
    %c0_i32 = arith.constant 0 : i32
    %c0_i32_0 = arith.constant 0 : i32
    %c0_i32_1 = arith.constant 0 : i32
    return %c0_i32, %c0_i32_0 : i32, i32
  }
  func.func @transform_10(%arg0: i32) -> (i32, i32) {
    %c0_i32 = arith.constant 0 : i32
    %c0_i32_0 = arith.constant 0 : i32
    %c0_i32_1 = arith.constant 0 : i32
    return %c0_i32, %c0_i32_0 : i32, i32
  }
  func.func @transform_11(%arg0: i32) -> (i32, i32) {
    %c0_i32 = arith.constant 0 : i32
    %c0_i32_0 = arith.constant 0 : i32
    %c0_i32_1 = arith.constant 0 : i32
    return %c0_i32, %c0_i32_0 : i32, i32
  }
  func.func @transform_12(%arg0: i32) -> (i32, i32) {
    %c0_i32 = arith.constant 0 : i32
    %c0_i32_0 = arith.constant 0 : i32
    %c0_i32_1 = arith.constant 0 : i32
    return %c0_i32, %c0_i32_0 : i32, i32
  }
  func.func @transform_13(%arg0: i32) -> (i32, i32, i32) {
    %c0_i32 = arith.constant 0 : i32
    %c0_i32_0 = arith.constant 0 : i32
    %c0_i32_1 = arith.constant 0 : i32
    return %arg0, %c0_i32, %c0_i32_0 : i32, i32, i32
  }
}

</mosaic_0001>

<bundles_post_ra>
// kernel: tpu_custom_call.1
= control target key start
LH: loop header
LB: loop body
LE: loop exit
PB: predicated region body
PF: predicated region fallthrough
CT: control target
= control target key end

     0   :  { %s1694_s0 = inlined_call_operand.vmem [shape: f32[2,8,32], index: 0, kind: input, shape index: {}]   ;;  %s1695_s1 = inlined_call_operand.vmem [shape: bf16[32,96], index: 1, kind: input, shape index: {}]   ;;  %s1696_s2 = inlined_call_operand.vmem [shape: f32[1,96], index: 2, kind: input, shape index: {}]   ;;  %s1697_s3 = inlined_call_operand.vmem [shape: bf16[4,8,32], index: 3, kind: input, shape index: {}]   ;;  %s1698_s4 = inlined_call_operand.vmem [shape: f32[1,32], index: 4, kind: input, shape index: {}]   ;;  %s1699_s5 = inlined_call_operand.vmem [shape: f32[1,32], index: 5, kind: input, shape index: {}]   ;;  %s1700_s6 = inlined_call_operand.vmem [shape: f32[1,32], index: 6, kind: input, shape index: {}]   ;;  %s1701_s7 = inlined_call_operand.hbm [shape: bf16[32,64], index: 7, kind: input, shape index: {}]   ;;  %s1702_s8 = inlined_call_operand.vmem [shape: f32[1,64], index: 8, kind: input, shape index: {}]   ;;  %s1703_s9 = inlined_call_operand.vmem [shape: bf16[64,32], index: 9, kind: input, shape index: {}]   ;;  %s1704_s10 = inlined_call_operand.vmem [shape: f32[1,32], index: 10, kind: input, shape index: {}]   ;;  %s1705_s11 = inlined_call_operand.vmem [shape: f32[1,32], index: 11, kind: input, shape index: {}]   ;;  %s1706_s12 = inlined_call_operand.vmem [shape: f32[1,32], index: 12, kind: input, shape index: {}]   ;;  %s1707_s13 = inlined_call_operand.hbm [shape: f32[2,8,32], index: 13, kind: output, shape index: {}]  }
   0x1   :  { %1709 = sst [smem:[#allocation11_spill]] %s1694_s0 }
   0x2   :  { %1710 = sst [smem:[#allocation12_spill]] %s1701_s7 }
   0x3   :  { %18 = vsyncpa [#allocation4], 0 }
   0x4   :  { %19 = vsyncpa [#allocation5], 0 }
   0x5   :  { %21 = vsyncpa [#allocation5 + $0x1], 0  ;;  %s1479_s25 = smov 0   ;;  %s1481_s26 = smov 0  }
   0x6   :  { %s1483_s27 = smov 0   ;;  %s1485_s28 = smov 0  }
   0x7 LB: > { %1711 = sst [smem:[#allocation9_spill]] %s1388_s27  ;;  %s1500_s29 = sadd.s32 4294967295, %s1392_s28   ;;  %s1392_s28 = sphi %s1485_s28, %s1721_s28   ;;  %s1388_s27 = sphi %s1483_s27, %s1718_s27   ;;  %s1384_s26 = sphi %s1481_s26, %s1720_s26   ;;  %s1380_s25 = sphi %s1479_s25, %s1719_s25  }
   0x8   : > { %s1129_s30 = sadd.s32 4294967294, %s1392_s28   ;;  %s1504_s14 = sadd.s32 1, %s1392_s28  }
   0x9   : > { %s312_s15 = sadd.s32 1, %s1388_s27  ;;  %s309_s16 = ssub.s32 %s1392_s28, %s1504_s14 }
   0xa   : > { %p322_p0 = scmp.ne.s32.totalorder %s1388_s27, %s1384_s26  ;;  %p310_p1 = scmp.eq.s32.totalorder %s309_s16, 0 }
   0xb   : > { %p323_p2 = scmp.eq.s32.totalorder %s1500_s29, 1  ;;  %p328_p3 = scmp.ne.s32.totalorder %s1384_s26, %s1380_s25 }
   0xc   : > { %p329_p4 = scmp.eq.s32.totalorder %s1129_s30, 1  ;;  %p1130_p7 = scmp.ge.s32.totalorder %s1392_s28, 1 }
   0xd   : > { %s1515_s17 = scalar_select %p310_p1, %s1388_s27, %s312_s15  }
   0xe   : > { %p1517_p5 = por %p323_p2, %p322_p0  ;;  %p1521_p6 = por %p329_p4, %p328_p3 }
   0xf   : > { %1712 = sst [smem:[#allocation10_spill]] %s1515_s17  ;;  %p336_p8 = scmp.lt.s32.totalorder %s1392_s28, 3 }
  0x10   : > { %p1214_p9 = scmp.eq.s32.totalorder %s1500_s29, 0  ;;  %s1715_s7 = sld [smem:[#allocation12_spill]] }
  0x11   : > { %p337_p10 = pnand %p1130_p7, %p336_p8  ;;  %s1394_s23 = smov [#allocation3]  }
  0x12   : > { %s367_s24 = sshll.u32 %s1394_s23, 4  ;;  %s1395_s30 = smov 64   ;;  %s368_s24 = int_to_ptr.vmem [resolvable:$true] %s367_s24 }
  0x13   : > { %p1206_p11 = pneg %p337_p10  ;;  %s1396_s15 = smov 4  }
  0x14   : > { %405 = sbr.rel (%p337_p10) target bundleno = 2776 (0xad8), region = 72 }
  0x15   : > { %p1207_p12 = pnand %p1214_p9, %p1206_p11 }
  0x16   : > { %s365_s22 = sshll.u32 %s1715_s7, 4  ;;  %s366_s22 = int_to_ptr.hbm [resolvable:$true] %s365_s22 }
  0x17   : > { %1209 = dma.hbm_to_vmem [thread:$0]  (!%p1207_p12), %s366_s22, 256, %s368_s24, [#allocation4], %s1395_s30, %s1395_s30, %s1396_s15  }
  0x19   : > { %1371 = dma.done.wait (%p1214_p9), [#allocation4], 256  }
  0x1a   : > { %1373 = vsyncadd (%p1214_p9), [#allocation4], 4294967040  ;;  %p449_p13 = scmp.lt.s32.totalorder %s1500_s29, 1  ;;  %s1716_s0 = sld [smem:[#allocation11_spill]]  ;;  %v1193_v0 = vld [vmem:[%s1695_s1 + $0x8] sm:$0xff]  ;;  %v1192_v1 = vld [vmem:[%s1695_s1] sm:$0xff] }
  0x1b   : > { %v1264_v2 = vld [vmem:[%s1698_s4] ss:$0 sm:$0xff]  ;;  %486 = vmatpush.bf16.msra.mxu0 %v1193_v0  ;;  %vm476_vm0 = vcmask 261120   ;;  %vm507_vm1 = vcmask 64512   ;;  %s1400_s21 = smov 56   ;;  %s1401_s23 = smov 112  }
  0x1c   : > { %s450_s16 = scalar_select %p449_p13, %s1500_s29, 1  ;;  %v1265_v6 = vld [vmem:[%s1696_s2] ss:$0 sm:$0xff]  ;;  %vm544_vm2 = vcmask 1043456   ;;  %v1151_v58 = vld [vmem:[%s1697_s3 + $0x4] sm:$0xf] }
  0x1d   : > { %s1402_s22 = smov 104   ;;  %v563_v22 = vld [vmem:[%s1697_s3] sm:$0xf]  ;;  %s1403_s15 = smov 64   ;;  %v652_v59 = vsel %vm544_vm2, %v1151_v58, 0  ;;  %v1408_v58 = vmov 32.0  }
  0x1e   : > { %s1136_s20 = sshll.u32 %s450_s16, 3  ;;  %s1398_s16 = smov 96   ;;  %v568_v23 = vsel %vm544_vm2, %v563_v22, 0  ;;  %vm991_vm11 = vcmask 523264  }
  0x1f   : > { %487 = vmatpush.bf16.msra.mxu0 %v1192_v1  ;;  %577 = vmatpush.bf16.msra.mxu3 %v568_v23  ;;  %s1404_s27 = smov 80   ;;  %s1405_s17 = smov 72  }
  0x20   : > { %s452_s7 = scalar_lea.vmem %s1716_s0, %s1136_s20  ;;  %s1399_s20 = smov 120  }
  0x21   : > { %v454_v3 = vld [vmem:[%s452_s7] sm:$0xff]  ;;  %s1397_s7 = smov 88  }
  0x22   : > { %v500_v4 = vadd.f32 %v1264_v2, %v454_v3  ;;  %v455_v5 = vpack.c.bf16 %v454_v3, %v454_v3 }
  0x23   : > { %661 = vmatpush.bf16.msrb.mxu0 %v652_v59 }
  0x24   : > { %501 = vst.msk [vmem:[#allocation2] sm:$0xff] %vm476_vm0, %v500_v4  ;;  %1145 = vmatmul.msk.bf16.vlgmr.msra.gmra.mxu0 %vm476_vm0, %v455_v5 }
  0x2b   : > { %v561_v46 = vld [vmem:[#allocation2] sm:$0xff] }
  0xa1   : > { %v489_v7 = vpop.f32.mrf.mxu0 }
  0xa2   : > { %v490_v8 = vadd.f32 %v1265_v6, %v489_v7 }
  0xa4   : > { %v493_v9 = vmul.f32 0.35355338, %v490_v8  ;;  %v495_v10 = vpack.c.bf16 %v490_v8, %v490_v8 }
  0xa6   : > { %v503_v11 = vunpack.c.l.b16 %v495_v10  ;;  %v494_v12 = vpack.c.bf16 %v493_v9, %v493_v9 }
  0xa8   : > { %v1556_v13 = vpack.c.b16 %v503_v11, %v503_v11  ;;  %v586_v15 = vunpack.c.l.b16 %v494_v12 }
  0xa9   : > { %v491_v14 = vpop.f32.mrf.mxu0 }
  0xaa   : > { %590 = vrot.lane.b32.xlu2 %v1556_v13, %s1397_s7  ;;  %505 = vrot.lane.b32.xlu0 %v1556_v13, %s1398_s16  ;;  %v587_v16 = vpack.c.b16 %v586_v15, %v586_v15 }
  0xb2   : > { %588 = vrot.lane.b32.xlu2 %v587_v16, %s1399_s20  ;;  %s1406_s20 = smov 48  }
 0x104   : > { %v591_v33 = vpop.permute.xlu2 %590 }
 0x105   : > { %v596_v37 = vsel %vm507_vm1, %v591_v33, 0 }
 0x10c   : > { %v589_v39 = vpop.permute.xlu2 %588 }
 0x11c   : > { %v506_v17 = vpop.permute.xlu0 %505 }
 0x11d   : > { %v512_v18 = vsel %vm507_vm1, %v506_v17, 0 }
 0x11e   : > { %521 = vmatpush.bf16.xpose.msra.mxu1 %v512_v18 }
 0x125   : > { %1146 = vmatmul.msk.bf16.vlgmr.msra.gmra.mxu1 %vm507_vm1, %v494_v12 }
 0x1a2   : > { %v523_v19 = vpop.f32.mrf.mxu1 }
 0x1a3   : > { %v527_v20 = vsel %vm507_vm1, %v523_v19, -inf }
 0x1a4   : > { %528 = vmax.xlane.f32.xlu0 %v527_v20 }
 0x1aa   : > { %v525_v21 = vpop.f32.mrf.mxu1 }
 0x1b8   : > { %623 = vrot.lane.b32.xlu0 %v1556_v13, %s1400_s21 }
 0x1c0   : > { %669 = vrot.lane.b32.xlu0 %v587_v16, %s1401_s23  ;;  %s1189_s23 = sshll.u32 %s1500_s29, 3 }
 0x1c8   : > { %750 = vrot.lane.b32.xlu0 %v587_v16, %s1402_s22  ;;  %s1407_s22 = smov 40  }
 0x217   : > { %v529_v24 = vpop.xlane.xlu0 %528 }
 0x218   : > { %v530_v25 = vsub.f32 %v523_v19, %v529_v24 }
 0x21a   : > { %v531_v26 = vmul.f32 1.442695, %v530_v25 }
 0x21c   : > { %1272 = vpow2.f32 %v531_v26 }
 0x222   : > { %v1273_v27 = vpop.eup %1272 }
 0x223   : > { %v533_v28 = vsel %vm507_vm1, %v1273_v27, 0.0 }
 0x224   : > { %534 = vadd.xlane.f32.xlu1 %v533_v28  ;;  %v1155_v28 = vld [vmem:[%s1697_s3 + $0x8] sm:$0xf] }
 0x22a   : > { %v624_v29 = vpop.permute.xlu0 %623 }
 0x22b   : > { %v629_v30 = vsel %vm544_vm2, %v624_v29, 0  ;;  %v733_v29 = vsel %vm544_vm2, %v1155_v28, 0 }
 0x22c   : > { %638 = vmatpush.bf16.msrb.mxu3 %v629_v30 }
 0x232   : > { %v670_v57 = vpop.permute.xlu0 %669 }
 0x23a   : > { %v751_v16 = vpop.permute.xlu0 %750 }
 0x23d   : > { %539 = vrot.lane.b32.xlu1 %v1556_v13, %s1403_s15 }
 0x297   : > { %v535_v31 = vpop.xlane.xlu1 %534 }
 0x298   : > { %1274 = vrcp.f32 %v535_v31 }
 0x29e   : > { %v1275_v32 = vpop.eup %1274 }
 0x29f   : > { %v537_v34 = vmul.f32 %v1275_v32, %v1273_v27 }
 0x2a1   : > { %v538_v38 = vpack.c.bf16 %v537_v34, %v537_v34 }
 0x2af   : > { %v540_v35 = vpop.permute.xlu1 %539 }
 0x2b0   : > { %v546_v36 = vsel %vm544_vm2, %v540_v35, 0 }
 0x2b1   : > { %555 = vmatpush.bf16.msra.mxu2 %v546_v36 }
 0x2b4   : > { %1147 = vmatmul.msk.bf16.vlgmr.msra.gmra.mxu2 %vm507_vm1, %v538_v38 }
 0x2b5   : > { %605 = vmatpush.bf16.xpose.msrb.mxu2 %v596_v37 }
 0x2c4   : > { %1149 = vmatmul.msk.bf16.vlgmr.msrb.gmra.mxu2 %vm507_vm1, %v589_v39 }
 0x337   : > { %v557_v40 = vpop.f32.mrf.mxu2 }
 0x338   : > { %v562_v41 = vpack.c.bf16 %v557_v40, %v557_v40 }
 0x33a   : > { %1148 = vmatmul.msk.bf16.vlgmr.msra.gmra.mxu3 %vm507_vm1, %v562_v41 }
 0x33b   : > { %742 = vmatpush.bf16.msra.mxu3 %v733_v29 }
 0x33f   : > { %v559_v42 = vpop.f32.mrf.mxu2 }
 0x347   : > { %v607_v43 = vpop.f32.mrf.mxu2 }
 0x348   : > { %v611_v44 = vsel %vm507_vm1, %v607_v43, -inf }
 0x349   : > { %612 = vmax.xlane.f32.xlu2 %v611_v44 }
 0x34f   : > { %v609_v45 = vpop.f32.mrf.mxu2 }
 0x361   : > { %671 = vrot.lane.b32.xlu2 %v1556_v13, %s1404_s27  ;;  %s1053_s27 = scalar_lea.hbm %s1707_s13, %s1189_s23 }
 0x362   : > { %s1057_s0 = sshll.u32 %s1053_s27, 4  ;;  %s1058_s0 = int_to_ptr.hbm [resolvable:$true] %s1057_s0 }
 0x363   : > { %s1340_s24 = sshra.s32 %s1058_s0, 4  ;;  %s1341_s24 = int_to_ptr.hbm [resolvable:$true] %s1340_s24 }
 0x364   : > { %s1342_s23 = scalar_lea.hbm %s1341_s24, 8  ;;  %p1347_p3 = scmp.lt.s32.totalorder %s1341_s24, %s1707_s13 }
 0x365   : > { %p1343_p0 = scmp.ne.s32.totalorder %s1341_s24, %s1342_s23 }
 0x367   : > { %p1344_p1 = pnand %p1343_p0, %p1517_p5 }
 0x369   : > { %p1345_p2 = pneg %p1344_p1 }
 0x3bc   : > { %v613_v47 = vpop.xlane.xlu2 %612 }
 0x3bd   : > { %v614_v48 = vsub.f32 %v607_v43, %v613_v47  ;;  %v579_v49 = vpop.f32.mrf.mxu3 }
 0x3be   : > { %v583_v50 = vadd.f32 %v579_v49, %v561_v46 }
 0x3bf   : > { %v615_v51 = vmul.f32 1.442695, %v614_v48 }
 0x3c0   : > { %584 = vst.msk [vmem:[#allocation2] sm:$0xff] %vm476_vm0, %v583_v50 }
 0x3c1   : > { %1276 = vpow2.f32 %v615_v51 }
 0x3c4   : > { %v672_v52 = vpop.permute.xlu2 %671 }
 0x3c5   : > { %v581_v53 = vpop.f32.mrf.mxu3  ;;  %v677_v54 = vsel %vm507_vm1, %v672_v52, 0 }
 0x3c6   : > { %686 = vmatpush.bf16.xpose.msrb.mxu1 %v677_v54 }
 0x3c7   : > { %v1277_v55 = vpop.eup %1276  ;;  %v644_v21 = vld [vmem:[#allocation2] sm:$0xff] }
 0x3c8   : > { %v617_v56 = vsel %vm507_vm1, %v1277_v55, 0.0 }
 0x3c9   : > { %618 = vadd.xlane.f32.xlu1 %v617_v56 }
 0x3cd   : > { %1153 = vmatmul.msk.bf16.vlgmr.msrb.gmra.mxu1 %vm507_vm1, %v670_v57 }
 0x3e2   : > { %752 = vrot.lane.b32.xlu1 %v1556_v13, %s1405_s17 }
 0x43c   : > { %v619_v60 = vpop.xlane.xlu1 %618 }
 0x43d   : > { %1278 = vrcp.f32 %v619_v60 }
 0x443   : > { %v1279_v61 = vpop.eup %1278 }
 0x444   : > { %v621_v62 = vmul.f32 %v1279_v61, %v1277_v55 }
 0x446   : > { %v622_v63 = vpack.c.bf16 %v621_v62, %v621_v62 }
 0x448   : > { %1150 = vmatmul.msk.bf16.vlgmr.msrb.gmra.mxu3 %vm507_vm1, %v622_v63 }
 0x44a   : > { %v688_v0 = vpop.f32.mrf.mxu1 }
 0x44b   : > { %v692_v1 = vsel %vm507_vm1, %v688_v0, -inf }
 0x44c   : > { %693 = vmax.xlane.f32.xlu2 %v692_v1 }
 0x452   : > { %v690_v2 = vpop.f32.mrf.mxu1 }
 0x454   : > { %v753_v3 = vpop.permute.xlu1 %752 }
 0x455   : > { %v758_v4 = vsel %vm507_vm1, %v753_v3, 0 }
 0x456   : > { %767 = vmatpush.bf16.xpose.msra.mxu0 %v758_v4 }
 0x464   : > { %704 = vrot.lane.b32.xlu2 %v1556_v13, %s1406_s20  ;;  %s446_s20 = sand.u32 1, %s1384_s26  }
 0x465   : > { %s1135_s21 = sshll.u32 %s446_s20, 3 }
 0x466   : > { %s448_s16 = scalar_lea.vmem [#allocation6], %s1135_s21  ;;  %s1346_s21 = scalar_lea.hbm %s1707_s13, 16 }
 0x467   : > { %s1055_s29 = sshll.u32 %s448_s16, 4  ;;  %p1348_p4 = scmp.lt.s32.totalorder %s1346_s21, %s1342_s23  ;;  %s1056_s29 = int_to_ptr.vmem [resolvable:$true] %s1055_s29 }
 0x469   : > { %p1349_p7 = por %p1348_p4, %p1347_p3 }
 0x46b   : > { %p1350_p8 = pnand %p1349_p7, %p1345_p2 }
 0x4bf   : > { %v694_v5 = vpop.xlane.xlu2 %693 }
 0x4c0   : > { %v695_v6 = vsub.f32 %v688_v0, %v694_v5 }
 0x4c2   : > { %v696_v7 = vmul.f32 1.442695, %v695_v6  ;;  %v1195_v6 = vld [vmem:[#allocation3 + $0x8] sm:$0xff] }
 0x4c3   : > { %903 = vmatpush.bf16.msrb.mxu3 %v1195_v6 }
 0x4c4   : > { %1280 = vpow2.f32 %v696_v7  ;;  %v1194_v7 = vld [vmem:[#allocation3] sm:$0xff] }
 0x4c7   : > { %v705_v8 = vpop.permute.xlu2 %704  ;;  %904 = vmatpush.bf16.msrb.mxu3 %v1194_v7 }
 0x4c8   : > { %v710_v9 = vsel %vm544_vm2, %v705_v8, 0 }
 0x4c9   : > { %719 = vmatpush.bf16.msra.mxu2 %v710_v9 }
 0x4ca   : > { %v1281_v10 = vpop.eup %1280 }
 0x4cb   : > { %v640_v11 = vpop.f32.mrf.mxu3  ;;  %v698_v12 = vsel %vm507_vm1, %v1281_v10, 0.0 }
 0x4cc   : > { %v645_v14 = vpack.c.bf16 %v640_v11, %v640_v11  ;;  %699 = vadd.xlane.f32.xlu1 %v698_v12 }
 0x4ce   : > { %1152 = vmatmul.msk.bf16.vlgmr.msrb.gmra.mxu0 %vm507_vm1, %v645_v14 }
 0x4d3   : > { %v642_v15 = vpop.f32.mrf.mxu3 }
 0x4de   : > { %1157 = vmatmul.msk.bf16.vlgmr.msra.gmra.mxu0 %vm507_vm1, %v751_v16 }
 0x53f   : > { %v700_v17 = vpop.xlane.xlu1 %699 }
 0x540   : > { %1282 = vrcp.f32 %v700_v17 }
 0x546   : > { %v1283_v18 = vpop.eup %1282 }
 0x547   : > { %v702_v19 = vmul.f32 %v1283_v18, %v1281_v10  ;;  %v1266_v18 = vld [vmem:[%s1699_s5] ss:$0 sm:$0xff] }
 0x549   : > { %v703_v20 = vpack.c.bf16 %v702_v19, %v702_v19 }
 0x54b   : > { %v663_v22 = vpop.f32.mrf.mxu0  ;;  %1154 = vmatmul.msk.bf16.vlgmr.msra.gmra.mxu2 %vm507_vm1, %v703_v20  ;;  %v1267_v20 = vld [vmem:[%s1700_s6] ss:$0 sm:$0xff] }
 0x54c   : > { %v667_v23 = vadd.f32 %v663_v22, %v644_v21 }
 0x54e   : > { %668 = vst.msk [vmem:[#allocation2] sm:$0xff] %vm476_vm0, %v667_v23 }
 0x553   : > { %v665_v24 = vpop.f32.mrf.mxu0 }
 0x555   : > { %v725_v38 = vld [vmem:[#allocation2] sm:$0xff] }
 0x55b   : > { %v769_v25 = vpop.f32.mrf.mxu0 }
 0x55c   : > { %v773_v26 = vsel %vm507_vm1, %v769_v25, -inf }
 0x55d   : > { %774 = vmax.xlane.f32.xlu0 %v773_v26  ;;  %v1268_v26 = vld [vmem:[%s1702_s8] ss:$0 sm:$0xff] }
 0x563   : > { %v771_v27 = vpop.f32.mrf.mxu0 }
 0x5ce   : > { %v721_v30 = vpop.f32.mrf.mxu2 }
 0x5cf   : > { %v726_v31 = vpack.c.bf16 %v721_v30, %v721_v30 }
 0x5d0   : > { %v775_v32 = vpop.xlane.xlu0 %774 }
 0x5d1   : > { %v776_v33 = vsub.f32 %v769_v25, %v775_v32  ;;  %1156 = vmatmul.msk.bf16.vlgmr.msra.gmra.mxu3 %vm507_vm1, %v726_v31 }
 0x5d3   : > { %v777_v34 = vmul.f32 1.442695, %v776_v33  ;;  %v1199_v33 = vld [vmem:[%s1703_s9 + $0x18] sm:$0xff] }
 0x5d4   : > { %999 = vmatpush.bf16.msrb.mxu0 %v1199_v33  ;;  %v1271_v33 = vld [vmem:[%s1706_s12] ss:$0 sm:$0xff] }
 0x5d5   : > { %1284 = vpow2.f32 %v777_v34 }
 0x5d6   : > { %v723_v35 = vpop.f32.mrf.mxu2 }
 0x5db   : > { %v1285_v36 = vpop.eup %1284 }
 0x5dc   : > { %v779_v37 = vsel %vm507_vm1, %v1285_v36, 0.0 }
 0x5dd   : > { %780 = vadd.xlane.f32.xlu0 %v779_v37 }
 0x5f1   : > { %785 = vrot.lane.b32.xlu0 %v1556_v13, %s1407_s22  ;;  %v1159_v13 = vld [vmem:[%s1697_s3 + $0xc] sm:$0xf]  ;;  %s1043_s22 = scalar_lea.sflag [#allocation5], %s446_s20 }
 0x5f2   : > { %v814_v48 = vsel %vm544_vm2, %v1159_v13, 0 }
 0x5f3   : > { %823 = vmatpush.bf16.msrb.mxu2 %v814_v48 }
 0x650   : > { %v781_v41 = vpop.xlane.xlu0 %780 }
 0x651   : > { %1286 = vrcp.f32 %v781_v41 }
 0x652   : > { %1288 = vrcp.f32 %v1408_v58 }
 0x654   : > { %v744_v39 = vpop.f32.mrf.mxu3 }
 0x655   : > { %v748_v40 = vadd.f32 %v744_v39, %v725_v38  ;;  %v1198_v38 = vld [vmem:[%s1703_s9 + $0x10] sm:$0xff] }
 0x656   : > { %1000 = vmatpush.bf16.msrb.mxu0 %v1198_v38 }
 0x657   : > { %749 = vst.msk [vmem:[#allocation2] sm:$0xff] %vm476_vm0, %v748_v40  ;;  %v1287_v43 = vpop.eup %1286 }
 0x658   : > { %v783_v44 = vmul.f32 %v1287_v43, %v1285_v36  ;;  %v1289_v59 = vpop.eup %1288  ;;  %v1197_v43 = vld [vmem:[%s1703_s9 + $0x8] sm:$0xff] }
 0x659   : > { %v838_v60 = vmul.f32 32.0, %v1289_v59  ;;  %vm842_vm3 = vweird.f32 %v1289_v59 }
 0x65a   : > { %v784_v47 = vpack.c.bf16 %v783_v44, %v783_v44  ;;  %1001 = vmatpush.bf16.msrb.mxu0 %v1197_v43 }
 0x65b   : > { %v839_v61 = vsub.f32 1.0, %v838_v60 }
 0x65c   : > { %v746_v42 = vpop.f32.mrf.mxu3 }
 0x65d   : > { %v840_v62 = vmul.f32 %v1289_v59, %v839_v61 }
 0x65e   : > { %v806_v52 = vld [vmem:[#allocation2] sm:$0xff] }
 0x65f   : > { %v841_v63 = vadd.f32 %v1289_v59, %v840_v62 }
 0x661   : > { %v1615_v0 = vsel %vm842_vm3, %v1289_v59, %v841_v63 }
 0x663   : > { %v786_v45 = vpop.permute.xlu0 %785 }
 0x664   : > { %v791_v46 = vsel %vm544_vm2, %v786_v45, 0 }
 0x665   : > { %800 = vmatpush.bf16.msra.mxu1 %v791_v46 }
 0x668   : > { %1158 = vmatmul.msk.bf16.vlgmr.msra.gmra.mxu1 %vm507_vm1, %v784_v47  ;;  %v1196_v47 = vld [vmem:[%s1703_s9] sm:$0xff] }
 0x669   : > { %1002 = vmatpush.bf16.msrb.mxu0 %v1196_v47 }
 0x6e5   : > { %v802_v49 = vpop.f32.mrf.mxu1 }
 0x6e6   : > { %v807_v50 = vpack.c.bf16 %v802_v49, %v802_v49 }
 0x6e8   : > { %1160 = vmatmul.msk.bf16.vlgmr.msrb.gmra.mxu2 %vm507_vm1, %v807_v50 }
 0x6ed   : > { %v804_v51 = vpop.f32.mrf.mxu1 }
 0x76b   : > { %v825_v53 = vpop.f32.mrf.mxu2 }
 0x76c   : > { %v829_v54 = vadd.f32 %v825_v53, %v806_v52 }
 0x76e   : > { %830 = vst.msk [vmem:[#allocation2] sm:$0xff] %vm476_vm0, %v829_v54 }
 0x773   : > { %v827_v55 = vpop.f32.mrf.mxu2 }
 0x775   : > { %v831_v56 = vld [vmem:[#allocation2] sm:$0xff] }
 0x776   : > { %v834_v57 = vsel %vm476_vm0, %v831_v56, 0.0 }
 0x777   : > { %835 = vadd.xlane.f32.xlu1 %v834_v57 }
 0x7ea   : > { %v836_v1 = vpop.xlane.xlu1 %835 }
 0x7eb   : > { %v844_v2 = vmul.f32 %v1615_v0, %v836_v1 }
 0x7ed   : > { %v845_v3 = vsub.f32 %v831_v56, %v844_v2 }
 0x7ef   : > { %v846_v4 = vmul.f32 %v845_v3, %v845_v3 }
 0x7f1   : > { %v847_v5 = vsel %vm476_vm0, %v846_v4, 0.0 }
 0x7f2   : > { %848 = vadd.xlane.f32.xlu2 %v847_v5 }
 0x865   : > { %v849_v8 = vpop.xlane.xlu2 %848 }
 0x866   : > { %v850_v9 = vmul.f32 %v849_v8, %v1615_v0 }
 0x868   : > { %v851_v10 = vadd.f32 1e-12, %v850_v9 }
 0x86a   : > { %1290 = vrsqrt.f32 %v851_v10  ;;  %vm858_vm5 = vweird.f32 %v851_v10 }
 0x870   : > { %v1291_v11 = vpop.eup %1290 }
 0x871   : > { %v853_v12 = vmul.f32 %v1291_v11, %v851_v10  ;;  %vm859_vm4 = vweird.f32 %v1291_v11  ;;  %v1269_v10 = vld [vmem:[%s1704_s10] ss:$0 sm:$0xff] }
 0x872   : > { %vm860_vm6 = vmor %vm858_vm5, %vm859_vm4 }
 0x873   : > { %v854_v14 = vmul.f32 %v1291_v11, %v853_v12 }
 0x875   : > { %v855_v15 = vmul.f32 0.5, %v854_v14 }
 0x877   : > { %v856_v16 = vsub.f32 1.5, %v855_v15 }
 0x879   : > { %v857_v17 = vmul.f32 %v1291_v11, %v856_v16 }
 0x87b   : > { %v861_v19 = vsel %vm860_vm6, %v1291_v11, %v857_v17 }
 0x87c   : > { %v862_v21 = vmul.f32 %v861_v19, %v845_v3 }
 0x87e   : > { %v866_v22 = vmul.f32 %v1266_v18, %v862_v21 }
 0x880   : > { %v870_v23 = vadd.f32 %v1267_v20, %v866_v22 }
 0x882   : > { %871 = vst.msk [vmem:[#allocation2] sm:$0xff] %vm476_vm0, %v870_v23 }
 0x889   : > { %v1627_v24 = vld [vmem:[#allocation2] sm:$0xff] }
 0x88a   : > { %v873_v25 = vpack.c.bf16 %v1627_v24, %v1627_v24 }
 0x88c   : > { %1169 = vmatmul.msk.bf16.vlgmr.msrb.gmra.mxu3 %vm476_vm0, %v873_v25 }
 0x90f   : > { %v906_v27 = vpop.f32.mrf.mxu3 }
 0x910   : > { %v907_v28 = vadd.f32 %v1268_v26, %v906_v27 }
 0x912   : > { %v911_v29 = vmul.f32 0.70710677, %v907_v28  ;;  %v910_v6 = vmul.f32 0.5, %v907_v28 }
 0x914   : > { %v912_v30 = vmul.f32 %v911_v29, %v911_v29 }
 0x916   : > { %v913_v31 = vmin.f32 %v912_v30, 16.0 }
 0x917   : > { %v908_v32 = vpop.f32.mrf.mxu3 }
 0x918   : > { %v914_v34 = vmul.f32 2.1237322e-06, %v913_v31  ;;  %v925_v35 = vmul.f32 3.8918573e-05, %v913_v31 }
 0x91a   : > { %v915_v36 = vadd.f32 0.00028619796, %v914_v34  ;;  %v926_v37 = vadd.f32 0.001143296, %v925_v35 }
 0x91c   : > { %v916_v39 = vmul.f32 %v915_v36, %v913_v31  ;;  %v927_v40 = vmul.f32 %v926_v37, %v913_v31 }
 0x91e   : > { %v928_v41 = vadd.f32 0.014752088, %v927_v40  ;;  %v917_v42 = vadd.f32 0.0036580483, %v916_v39 }
 0x920   : > { %v929_v44 = vmul.f32 %v928_v41, %v913_v31  ;;  %v918_v46 = vmul.f32 %v917_v42, %v913_v31 }
 0x922   : > { %v930_v45 = vadd.f32 0.112945676, %v929_v44  ;;  %v919_v49 = vadd.f32 0.05243302, %v918_v46 }
 0x924   : > { %v931_v13 = vmul.f32 %v930_v45, %v913_v31  ;;  %v920_v52 = vmul.f32 %v919_v49, %v913_v31 }
 0x926   : > { %v932_v48 = vadd.f32 0.4994258, %v931_v13  ;;  %v921_v53 = vadd.f32 0.18741608, %v920_v52 }
 0x928   : > { %v933_v50 = vmul.f32 %v932_v48, %v913_v31  ;;  %v922_v55 = vmul.f32 %v921_v53, %v913_v31  ;;  %v1270_v31 = vld [vmem:[%s1705_s11] ss:$0 sm:$0xff] }
 0x92a   : > { %v934_v51 = vadd.f32 1.0, %v933_v50  ;;  %v923_v59 = vadd.f32 1.1283791, %v922_v55 }
 0x92c   : > { %1292 = vrcp.f32 %v934_v51  ;;  %v946_v58 = vand.u32 2147483648, %v934_v51  ;;  %v944_v61 = vand.u32 2147483647, %v934_v51  ;;  %vm940_vm8 = vweird.f32 %v934_v51 }
 0x92d   : > { %v924_v1 = vmul.f32 %v923_v59, %v911_v29 }
 0x92e   : > { %v947_v63 = vor.u32 1.1754944e-38, %v946_v58  ;;  %vm945_vm10 = vcmp.eq.f32.partialorder %v944_v61, 8.507059e+37 }
 0x932   : > { %v1293_v54 = vpop.eup %1292 }
 0x933   : > { %v936_v56 = vmul.f32 %v1293_v54, %v934_v51  ;;  %vm941_vm7 = vweird.f32 %v1293_v54 }
 0x934   : > { %vm942_vm9 = vmor %vm940_vm8, %vm941_vm7 }
 0x935   : > { %v937_v57 = vsub.f32 1.0, %v936_v56 }
 0x937   : > { %v938_v60 = vmul.f32 %v1293_v54, %v937_v57 }
 0x939   : > { %v939_v62 = vadd.f32 %v1293_v54, %v938_v60 }
 0x93b   : > { %v943_v2 = vsel %vm942_vm9, %v1293_v54, %v939_v62 }
 0x93c   : > { %v948_v3 = vsel %vm945_vm10, %v947_v63, %v943_v2 }
 0x93d   : > { %v949_v4 = vmul.f32 %v948_v3, %v924_v1 }
 0x93f   : > { %v1170_v5 = vclamps-f32 %v949_v4, 1.0 }
 0x941   : > { %v952_v7 = vadd.f32 1.0, %v1170_v5 }
 0x943   : > { %v953_v8 = vmul.f32 %v952_v7, %v910_v6 }
 0x945   : > { %v954_v9 = vpack.c.bf16 %v953_v8, %v953_v8 }
 0x947   : > { %1187 = vmatmul.msk.bf16.vlgmr.msrb.gmra.mxu0 %vm991_vm11, %v954_v9 }
 0x9c4   : > { %v1004_v11 = vpop.f32.mrf.mxu0 }
 0x9c5   : > { %v1005_v12 = vadd.f32 %v1269_v10, %v1004_v11 }
 0x9c7   : > { %v1008_v14 = vadd.f32 %v1005_v12, %v1627_v24 }
 0x9c9   : > { %v1011_v15 = vsel %vm476_vm0, %v1008_v14, 0.0 }
 0x9ca   : > { %1012 = vadd.xlane.f32.xlu1 %v1011_v15 }
 0x9cc   : > { %v1006_v16 = vpop.f32.mrf.mxu0 }
 0xa3d   : > { %v1013_v17 = vpop.xlane.xlu1 %1012 }
 0xa3e   : > { %v1014_v18 = vmul.f32 %v1013_v17, %v1615_v0 }
 0xa40   : > { %v1015_v19 = vsub.f32 %v1008_v14, %v1014_v18 }
 0xa42   : > { %v1016_v20 = vmul.f32 %v1015_v19, %v1015_v19 }
 0xa44   : > { %v1017_v21 = vsel %vm476_vm0, %v1016_v20, 0.0 }
 0xa45   : > { %1018 = vadd.xlane.f32.xlu0 %v1017_v21 }
 0xab8   : > { %v1019_v22 = vpop.xlane.xlu0 %1018 }
 0xab9   : > { %v1020_v23 = vmul.f32 %v1019_v22, %v1615_v0 }
 0xabb   : > { %v1021_v25 = vadd.f32 1e-12, %v1020_v23 }
 0xabd   : > { %1294 = vrsqrt.f32 %v1021_v25  ;;  %vm1028_vm13 = vweird.f32 %v1021_v25 }
 0xac3   : > { %v1295_v24 = vpop.eup %1294 }
 0xac4   : > { %v1023_v26 = vmul.f32 %v1295_v24, %v1021_v25  ;;  %vm1029_vm12 = vweird.f32 %v1295_v24 }
 0xac5   : > { %vm1030_vm14 = vmor %vm1028_vm13, %vm1029_vm12 }
 0xac6   : > { %v1024_v27 = vmul.f32 %v1295_v24, %v1023_v26 }
 0xac8   : > { %v1025_v28 = vmul.f32 0.5, %v1024_v27 }
 0xaca   : > { %v1026_v29 = vsub.f32 1.5, %v1025_v28 }
 0xacc   : > { %v1027_v30 = vmul.f32 %v1295_v24, %v1026_v29 }
 0xace   : > { %v1031_v0 = vsel %vm1030_vm14, %v1295_v24, %v1027_v30 }
 0xacf   : > { %v1032_v32 = vmul.f32 %v1031_v0, %v1015_v19 }
 0xad1   : > { %v1036_v34 = vmul.f32 %v1270_v31, %v1032_v32 }
 0xad3   : > { %v1040_v35 = vadd.f32 %v1271_v33, %v1036_v34 }
 0xad5   : > { %1041 = vst.msk [vmem:[%s448_s16] sm:$0xff] %vm476_vm0, %v1040_v35 }
 0xad6   : > { %1353 = shalt.err (!%p1350_p8)
}
 0xad7   : > { %1204 = dma.vmem_to_hbm [thread:$0]  (%p1517_p5), %s1056_s29, 128, %s1058_s0, %s1043_s22  }
 0xad8 PF: > { %p1216_p9 = scmp.ge.s32.totalorder %s1392_s28, 2  ;;  %s1069_s20 = sand.u32 1, %s1380_s25  }
 0xad9   : > { %s1070_s7 = scalar_lea.sflag [#allocation5], %s1069_s20 }
 0xada   : > { %p1211_p10 = pnand %p1216_p9, %p1521_p6 }
 0xadc   : > { %p1212_p11 = pneg %p1211_p10 }
 0xade   : > { %1375 = dma.done.wait (%p1212_p11), %s1070_s7, 128  }
 0xadf   : > { %1377 = vsyncadd (%p1212_p11), %s1070_s7, 4294967168  ;;  %s1717_s16 = sld [smem:[#allocation9_spill]]  ;;  %p24_p12 = scmp.ge.s32.totalorder %s1504_s14, 4  }
 0xae0   : > { %s1718_s27 = sld [smem:[#allocation10_spill]]  ;;  %s1719_s25 = smov %s1384_s26 }
 0xae1   : > { %s1721_s28 = smov %s1504_s14  ;;  %26 = sbr.rel (!%p24_p12) target bundleno = 7 (0x7), region = 115 }
 0xae5   : > { %s1720_s26 = smov %s1717_s16 }
 0xae6   :  { %1076 = vsyncpa [#allocation4], 1 }
 0xae7   :  { %1078 = vsyncpa [#allocation4 + $0x1], 1 }
 0xae8   :  { %1079 = vsyncpa [#allocation5], 1 }
 0xae9   :  { %1081 = vsyncpa [#allocation5 + $0x1], 1 }

</bundles_post_ra>
